<compile_context>
chip_gen: v5e
topology: v5e:2x2
jax: 0.10.0
libtpu: 0.0.40
codegen_flags: <defaults>
</compile_context>

<pallas_src>
import jax
import jax.numpy as jnp
from jax.experimental import pallas as pl
from jax.experimental.pallas import tpu as pltpu

_BLOCK_B = 2048  # max batch rows per grid step (f32); ~8 MiB/step of VMEM.


def _mlp_kernel(x_ref, w1_ref, b1_ref, w2_ref, b2_ref, w3_ref, b3_ref, o_ref):
    x = x_ref[...]
    # Layer 1: Linear + ReLU
    h1 = jnp.dot(x, w1_ref[...], preferred_element_type=jnp.float32) + b1_ref[...]
    h1 = jnp.maximum(h1, 0.0)
    # Layer 2: Linear + (Dropout == identity at inference) + ReLU
    h2 = jnp.dot(h1, w2_ref[...], preferred_element_type=jnp.float32) + b2_ref[...]
    h2 = jnp.maximum(h2, 0.0)
    # Layer 3: Linear (unpadded O columns) + sigmoid -> EUP exp slot
    logits = jnp.dot(h2, w3_ref[...], preferred_element_type=jnp.float32) + b3_ref[...]
    o_ref[...] = jax.nn.sigmoid(logits).astype(o_ref.dtype)


def _round_up(n, m):
    return ((n + m - 1) // m) * m


def prepare_params(w1, b1, w2, b2, w3, b3):
    """Pad the hidden dim to a multiple of 128 ONCE (outside the jitted forward).

    w_i: [in_i, out_i] (pre-transposed vs a PyTorch nn.Linear state_dict),
    b_i: [1, out_i].  Padding is exact: zero weight rows/cols + zero bias keep
    padded hidden activations at relu(0) = 0, and w3's padded rows are zero so
    the (unpadded) output columns are unchanged.
    """
    H = w1.shape[1]
    Hp = _round_up(H, 128)
    w1p = jnp.pad(w1, ((0, 0), (0, Hp - H)))
    b1p = jnp.pad(b1, ((0, 0), (0, Hp - H)))
    w2p = jnp.pad(w2, ((0, Hp - H), (0, Hp - H)))
    b2p = jnp.pad(b2, ((0, 0), (0, Hp - H)))
    w3p = jnp.pad(w3, ((0, Hp - H), (0, 0)))   # pad contraction dim only; O stays unpadded
    b3p = b3                                   # [1, O], unpadded
    return w1p, b1p, w2p, b2p, w3p, b3p


@jax.jit
def toxicity_classifier_forward(x, w1p, b1p, w2p, b2p, w3p, b3p):
    """x: [B, input_size]; padded params from prepare_params(). Returns [B, output_size]."""
    B, F = x.shape
    Hp = w1p.shape[1]
    O = w3p.shape[1]

    # Batch tile: multiple of 8 (sublane), capped by _BLOCK_B, and small enough
    # that the grid has >= 2 steps whenever B > 8 (so v7x can split the
    # "parallel" batch axis across its 2 TensorCores).  For B <= 8 use a single
    # full block (block dim == array dim is always legal).
    if B <= 8:
        bB = B
    else:
        bB = min(_BLOCK_B, _round_up(pl.cdiv(B, 2), 8))
    grid = (pl.cdiv(B, bB),)  # ragged last block handled by Pallas

    def resident(arr):
        # Constant block index across the grid -> DMA'd once, single buffer.
        return pl.BlockSpec(arr.shape, lambda i: (0, 0),
                            pipeline_mode=pl.Buffered(1))

    flops = int(2 * B * (F * Hp + Hp * Hp + Hp * O))
    bytes_accessed = int(4 * (B * F + B * O
                              + F * Hp + Hp * Hp + Hp * O + 2 * Hp + O))

    out = pl.pallas_call(
        _mlp_kernel,
        out_shape=jax.ShapeDtypeStruct((B, O), jnp.float32),
        grid=grid,
        in_specs=[
            pl.BlockSpec((bB, F), lambda i: (i, 0)),  # pipelined x tile (F NOT padded)
            resident(w1p), resident(b1p),             # VMEM-resident weights/biases
            resident(w2p), resident(b2p),
            resident(w3p), resident(b3p),
        ],
        out_specs=pl.BlockSpec((bB, O), lambda i: (i, 0)),  # unpadded, O == full dim
        compiler_params=pltpu.CompilerParams(
            dimension_semantics=("parallel",),        # v7x: shard batch across 2 TCs
            vmem_limit_bytes=32 * 1024 * 1024,        # v5e scoped default is only 16 MiB
        ),
        cost_estimate=pl.CostEstimate(
            flops=flops,
            transcendentals=int(B * O),
            bytes_accessed=bytes_accessed,
        ),
    )(x, w1p, b1p, w2p, b2p, w3p, b3p)

    return out


def init_params(key, input_size, hidden_size, output_size):
    """Deterministic init mimicking nn.Linear default (uniform +-1/sqrt(fan_in)).
    Weights are stored pre-transposed as [in, out]; biases as [1, out].
    (A raw PyTorch state_dict weight [out, in] / bias [out] must be
    transposed / reshaped to this layout before use.)"""
    ks = jax.random.split(key, 6)

    def linear(kw, kb, fan_in, fan_out):
        bound = 1.0 / jnp.sqrt(jnp.float32(fan_in))
        w = jax.random.uniform(kw, (fan_in, fan_out), jnp.float32, -bound, bound)
        b = jax.random.uniform(kb, (1, fan_out), jnp.float32, -bound, bound)
        return w, b

    w1, b1 = linear(ks[0], ks[1], input_size, hidden_size)
    w2, b2 = linear(ks[2], ks[3], hidden_size, hidden_size)
    w3, b3 = linear(ks[4], ks[5], hidden_size, output_size)
    return w1, b1, w2, b2, w3, b3


def _reference(x, params):
    w1, b1, w2, b2, w3, b3 = params
    h1 = jnp.maximum(x @ w1 + b1, 0.0)
    h2 = jnp.maximum(h1 @ w2 + b2, 0.0)
    return jax.nn.sigmoid(h2 @ w3 + b3)


if __name__ == "__main__":
    key = jax.random.PRNGKey(0)
    k_x, k_x2, k_p = jax.random.split(key, 3)

    input_size = 32
    hidden_size = 32
    output_size = 4
    raw_params = init_params(k_p, input_size, hidden_size, output_size)
    padded_params = prepare_params(*raw_params)   # padded once, outside jit

    # Small case (single grid step, full block).
    batch = 8
    x = jax.random.normal(k_x, (batch, input_size), jnp.float32)
    out = jax.block_until_ready(toxicity_classifier_forward(x, *padded_params))
    ref = _reference(x, raw_params)
    assert out.shape == (batch, output_size)
    assert jnp.allclose(out, ref, atol=1e-5, rtol=1e-5)

    # Larger, non-multiple batch: 2-step grid (megacore-splittable) + ragged
    # last block (rows 504..999 valid out of a 504-row tile).
    batch2 = 1000
    x2 = jax.random.normal(k_x2, (batch2, input_size), jnp.float32)
    out2 = jax.block_until_ready(toxicity_classifier_forward(x2, *padded_params))
    ref2 = _reference(x2, raw_params)
    assert out2.shape == (batch2, output_size)
    assert jnp.allclose(out2, ref2, atol=1e-5, rtol=1e-5)

    print("KERNEL_OK")
</pallas_src>

<mosaic_0001>
module attributes {stable_mosaic.version = 11 : i64} {
  func.func @_mlp_kernel(%arg0: i32, %arg1: memref<8x32xf32, #tpu.memory_space<vmem>>, %arg2: memref<32x128xf32, #tpu.memory_space<vmem>>, %arg3: memref<1x128xf32, #tpu.memory_space<vmem>>, %arg4: memref<128x128xf32, #tpu.memory_space<vmem>>, %arg5: memref<1x128xf32, #tpu.memory_space<vmem>>, %arg6: memref<128x4xf32, #tpu.memory_space<vmem>>, %arg7: memref<1x4xf32, #tpu.memory_space<vmem>>, %arg8: memref<8x4xf32, #tpu.memory_space<vmem>>) attributes {dimension_semantics = [#tpu.dimension_semantics<parallel>], iteration_bounds = array<i64: 1>, scalar_prefetch = 0 : i64, scratch_operands = 0 : i64, tpu.core_type = #tpu.core_type<tc>, window_params = [{transform_indices = @transform_0, window_bounds = array<i64: 8, 32>}, {pipeline_mode = #tpu.pipeline_mode<synchronous>, transform_indices = @transform_1, window_bounds = array<i64: 32, 128>}, {pipeline_mode = #tpu.pipeline_mode<synchronous>, transform_indices = @transform_2, window_bounds = array<i64: 1, 128>}, {pipeline_mode = #tpu.pipeline_mode<synchronous>, transform_indices = @transform_3, window_bounds = array<i64: 128, 128>}, {pipeline_mode = #tpu.pipeline_mode<synchronous>, transform_indices = @transform_4, window_bounds = array<i64: 1, 128>}, {pipeline_mode = #tpu.pipeline_mode<synchronous>, transform_indices = @transform_5, window_bounds = array<i64: 128, 4>}, {pipeline_mode = #tpu.pipeline_mode<synchronous>, transform_indices = @transform_6, window_bounds = array<i64: 1, 4>}, {transform_indices = @transform_7, window_bounds = array<i64: 8, 4>}]} {
    %c0 = arith.constant 0 : index
    %c0_0 = arith.constant 0 : index
    %0 = vector.load %arg1[%c0, %c0_0] : memref<8x32xf32, #tpu.memory_space<vmem>>, vector<8x32xf32>
    %c0_1 = arith.constant 0 : index
    %c0_2 = arith.constant 0 : index
    %1 = vector.load %arg2[%c0_1, %c0_2] : memref<32x128xf32, #tpu.memory_space<vmem>>, vector<32x128xf32>
    %cst = arith.constant dense<0.000000e+00> : vector<8x128xf32>
    %2 = tpu.matmul %0, %1, %cst {dimension_numbers = #tpu.dot_dimension_numbers<[1], [0], [0], [1], [0, 0, 1, 1], [], []>} : vector<8x32xf32>, vector<32x128xf32>, vector<8x128xf32> -> vector<8x128xf32>
    %c0_3 = arith.constant 0 : index
    %c0_4 = arith.constant 0 : index
    %3 = vector.load %arg3[%c0_3, %c0_4] : memref<1x128xf32, #tpu.memory_space<vmem>>, vector<1x128xf32>
    %4 = vector.broadcast %3 : vector<1x128xf32> to vector<8x128xf32>
    %5 = arith.addf %2, %4 : vector<8x128xf32>
    %cst_5 = arith.constant 0.000000e+00 : f32
    %6 = vector.broadcast %cst_5 : f32 to vector<8x128xf32>
    %7 = arith.maximumf %5, %6 : vector<8x128xf32>
    %c0_6 = arith.constant 0 : index
    %c0_7 = arith.constant 0 : index
    %8 = vector.load %arg4[%c0_6, %c0_7] : memref<128x128xf32, #tpu.memory_space<vmem>>, vector<128x128xf32>
    %cst_8 = arith.constant dense<0.000000e+00> : vector<8x128xf32>
    %9 = tpu.matmul %7, %8, %cst_8 {dimension_numbers = #tpu.dot_dimension_numbers<[1], [0], [0], [1], [0, 0, 1, 1], [], []>} : vector<8x128xf32>, vector<128x128xf32>, vector<8x128xf32> -> vector<8x128xf32>
    %c0_9 = arith.constant 0 : index
    %c0_10 = arith.constant 0 : index
    %10 = vector.load %arg5[%c0_9, %c0_10] : memref<1x128xf32, #tpu.memory_space<vmem>>, vector<1x128xf32>
    %11 = vector.broadcast %10 : vector<1x128xf32> to vector<8x128xf32>
    %12 = arith.addf %9, %11 : vector<8x128xf32>
    %cst_11 = arith.constant 0.000000e+00 : f32
    %13 = vector.broadcast %cst_11 : f32 to vector<8x128xf32>
    %14 = arith.maximumf %12, %13 : vector<8x128xf32>
    %c0_12 = arith.constant 0 : index
    %c0_13 = arith.constant 0 : index
    %15 = vector.load %arg6[%c0_12, %c0_13] : memref<128x4xf32, #tpu.memory_space<vmem>>, vector<128x4xf32>
    %cst_14 = arith.constant dense<0.000000e+00> : vector<8x4xf32>
    %16 = tpu.matmul %14, %15, %cst_14 {dimension_numbers = #tpu.dot_dimension_numbers<[1], [0], [0], [1], [0, 0, 1, 1], [], []>} : vector<8x128xf32>, vector<128x4xf32>, vector<8x4xf32> -> vector<8x4xf32>
    %c0_15 = arith.constant 0 : index
    %c0_16 = arith.constant 0 : index
    %17 = vector.load %arg7[%c0_15, %c0_16] : memref<1x4xf32, #tpu.memory_space<vmem>>, vector<1x4xf32>
    %18 = vector.broadcast %17 : vector<1x4xf32> to vector<8x4xf32>
    %19 = arith.addf %16, %18 : vector<8x4xf32>
    %20 = arith.negf %19 : vector<8x4xf32>
    %21 = math.exp %20 : vector<8x4xf32>
    %cst_17 = arith.constant 1.000000e+00 : f32
    %22 = vector.broadcast %cst_17 : f32 to vector<8x4xf32>
    %23 = arith.addf %22, %21 : vector<8x4xf32>
    %24 = arith.divf %22, %23 : vector<8x4xf32>
    %c0_18 = arith.constant 0 : index
    %c0_19 = arith.constant 0 : index
    %25 = vector.load %arg8[%c0_18, %c0_19] : memref<8x4xf32, #tpu.memory_space<vmem>>, vector<8x4xf32>
    tpu.vector_store %arg8[%c0_18, %c0_19], %24 {strides = array<i32>} : memref<8x4xf32, #tpu.memory_space<vmem>>, vector<8x4xf32>,
    return
  }
  func.func @transform_0(%arg0: i32) -> (i32, i32) {
    %c0_i32 = arith.constant 0 : i32
    %c0_i32_0 = arith.constant 0 : i32
    return %arg0, %c0_i32 : i32, i32
  }
  func.func @transform_1(%arg0: i32) -> (i32, i32) {
    %c0_i32 = arith.constant 0 : i32
    %c0_i32_0 = arith.constant 0 : i32
    %c0_i32_1 = arith.constant 0 : i32
    return %c0_i32, %c0_i32_0 : i32, i32
  }
  func.func @transform_2(%arg0: i32) -> (i32, i32) {
    %c0_i32 = arith.constant 0 : i32
    %c0_i32_0 = arith.constant 0 : i32
    %c0_i32_1 = arith.constant 0 : i32
    return %c0_i32, %c0_i32_0 : i32, i32
  }
  func.func @transform_3(%arg0: i32) -> (i32, i32) {
    %c0_i32 = arith.constant 0 : i32
    %c0_i32_0 = arith.constant 0 : i32
    %c0_i32_1 = arith.constant 0 : i32
    return %c0_i32, %c0_i32_0 : i32, i32
  }
  func.func @transform_4(%arg0: i32) -> (i32, i32) {
    %c0_i32 = arith.constant 0 : i32
    %c0_i32_0 = arith.constant 0 : i32
    %c0_i32_1 = arith.constant 0 : i32
    return %c0_i32, %c0_i32_0 : i32, i32
  }
  func.func @transform_5(%arg0: i32) -> (i32, i32) {
    %c0_i32 = arith.constant 0 : i32
    %c0_i32_0 = arith.constant 0 : i32
    %c0_i32_1 = arith.constant 0 : i32
    return %c0_i32, %c0_i32_0 : i32, i32
  }
  func.func @transform_6(%arg0: i32) -> (i32, i32) {
    %c0_i32 = arith.constant 0 : i32
    %c0_i32_0 = arith.constant 0 : i32
    %c0_i32_1 = arith.constant 0 : i32
    return %c0_i32, %c0_i32_0 : i32, i32
  }
  func.func @transform_7(%arg0: i32) -> (i32, i32) {
    %c0_i32 = arith.constant 0 : i32
    %c0_i32_0 = arith.constant 0 : i32
    return %arg0, %c0_i32 : i32, i32
  }
}

</mosaic_0001>

<bundles_post_ra>
// kernel: toxicity_classifier_forward.1
= control target key start
LH: loop header
LB: loop body
LE: loop exit
PB: predicated region body
PF: predicated region fallthrough
CT: control target
= control target key end

     0   :  { %12 = vsyncpa [#allocation3], 0  ;;  %s421_s0 = inlined_call_operand.hbm [shape: f32[8,32], index: 0, kind: input, shape index: {}]   ;;  %s422_s1 = inlined_call_operand.hbm [shape: f32[32,128], index: 1, kind: input, shape index: {}]   ;;  %s423_s2 = inlined_call_operand.vmem [shape: f32[1,128], index: 2, kind: input, shape index: {}]   ;;  %s424_s3 = inlined_call_operand.vmem [shape: f32[128,128], index: 3, kind: input, shape index: {}]   ;;  %s425_s4 = inlined_call_operand.vmem [shape: f32[1,128], index: 4, kind: input, shape index: {}]   ;;  %s426_s5 = inlined_call_operand.vmem [shape: f32[128,4], index: 5, kind: input, shape index: {}]   ;;  %s427_s6 = inlined_call_operand.vmem [shape: f32[1,4], index: 6, kind: input, shape index: {}]   ;;  %s428_s7 = inlined_call_operand.vmem [shape: f32[8,4], index: 7, kind: output, shape index: {}]  }
   0x1   :  { %s19_s26 = sshll.u32 %s421_s0, 4  ;;  %s20_s26 = int_to_ptr.hbm [resolvable:$true] %s19_s26 }
   0x2   :  { %13 = vsyncpa [#allocation5], 0  ;;  %s263_s27 = smov [#allocation2]   ;;  %s29_s8 = sshll.u32 %s422_s1, 4  ;;  %s30_s8 = int_to_ptr.hbm [resolvable:$true] %s29_s8 }
   0x3   :  { %s21_s28 = sshll.u32 %s263_s27, 4  ;;  %s264_s9 = smov [#allocation4]   ;;  %s22_s28 = int_to_ptr.vmem [resolvable:$true] %s21_s28 }
   0x4   :  { %24 = dma.hbm_to_vmem [thread:$0]  %s20_s26, 128, %s22_s28, [#allocation3]  }
   0x5   :  { %s31_s10 = sshll.u32 %s264_s9, 4  ;;  %s265_s11 = smov 128   ;;  %s32_s10 = int_to_ptr.vmem [resolvable:$true] %s31_s10 }
   0x6   :  { %s266_s12 = smov 8  }
   0x7   :  { %37 = dma.hbm_to_vmem [thread:$0]  %s30_s8, 512, %s32_s10, [#allocation5], %s265_s11, %s265_s11, %s266_s12  }
   0x8   :  { %259 = dma.done.wait [#allocation3], 128  }
   0x9   :  { %260 = vsyncadd [#allocation3], 4294967168 }
   0xa   :  { %261 = dma.done.wait [#allocation5], 512  }
   0xb   :  { %262 = vsyncadd [#allocation5], 4294966784  ;;  %v60_v0 = vld [vmem:[#allocation4 + $0x18] sm:$0xff]  ;;  %v59_v1 = vld [vmem:[#allocation4 + $0x10] sm:$0xff]  ;;  %vm65_vm0 = vcmask 261120   ;;  %vm190_vm4 = vcmask 31744  }
   0xc   :  { %81 = vmatpush.msra.mxu0 %v60_v0  ;;  %v105_v2 = vld [vmem:[%s424_s3 + $0x78] sm:$0xff]  ;;  %v58_v3 = vld [vmem:[#allocation4 + $0x8] sm:$0xff]  ;;  %v103_v5 = vld [vmem:[%s424_s3 + $0x68] sm:$0xff] }
   0xd   :  { %110 = vmatpush.msra.mxu1 %v105_v2  ;;  %v104_v4 = vld [vmem:[%s424_s3 + $0x70] sm:$0xff]  ;;  %v57_v6 = vld [vmem:[#allocation4] sm:$0xff]  ;;  %v56_v7 = vld [vmem:[#allocation2] sm:$0xff] }
   0xe   :  { %82 = vmatpush.msra.mxu0 %v59_v1  ;;  %v102_v8 = vld [vmem:[%s424_s3 + $0x60] sm:$0xff]  ;;  %v101_v9 = vld [vmem:[%s424_s3 + $0x58] sm:$0xff]  ;;  %v100_v10 = vld [vmem:[%s424_s3 + $0x50] sm:$0xff] }
   0xf   :  { %111 = vmatpush.msra.mxu1 %v104_v4  ;;  %v99_v11 = vld [vmem:[%s424_s3 + $0x48] sm:$0xff]  ;;  %v98_v12 = vld [vmem:[%s424_s3 + $0x40] sm:$0xff]  ;;  %v97_v13 = vld [vmem:[%s424_s3 + $0x38] sm:$0xff] }
  0x10   :  { %83 = vmatpush.msra.mxu0 %v58_v3  ;;  %v96_v14 = vld [vmem:[%s424_s3 + $0x30] sm:$0xff]  ;;  %v95_v15 = vld [vmem:[%s424_s3 + $0x28] sm:$0xff]  ;;  %v94_v16 = vld [vmem:[%s424_s3 + $0x20] sm:$0xff] }
  0x11   :  { %112 = vmatpush.msra.mxu1 %v103_v5  ;;  %v93_v17 = vld [vmem:[%s424_s3 + $0x18] sm:$0xff]  ;;  %v92_v18 = vld [vmem:[%s424_s3 + $0x10] sm:$0xff]  ;;  %v91_v19 = vld [vmem:[%s424_s3 + $0x8] sm:$0xff] }
  0x12   :  { %84 = vmatpush.msra.mxu0 %v57_v6  ;;  %v90_v20 = vld [vmem:[%s424_s3] sm:$0xff]  ;;  %v146_v21 = vld [vmem:[%s426_s5 + $0x78] sm:$0xff]  ;;  %v145_v22 = vld [vmem:[%s426_s5 + $0x70] sm:$0xff] }
  0x13   :  { %198 = vmatmul.msk.f32.vlgmr.msra.gmra.mxu0 %vm65_vm0, %v56_v7  ;;  %113 = vmatpush.msra.mxu1 %v102_v8  ;;  %v144_v23 = vld [vmem:[%s426_s5 + $0x68] sm:$0xff]  ;;  %v143_v24 = vld [vmem:[%s426_s5 + $0x60] sm:$0xff]  ;;  %v142_v25 = vld [vmem:[%s426_s5 + $0x58] sm:$0xff] }
  0x14   :  { %151 = vmatpush.msra.mxu2 %v146_v21  ;;  %v141_v26 = vld [vmem:[%s426_s5 + $0x50] sm:$0xff]  ;;  %v140_v27 = vld [vmem:[%s426_s5 + $0x48] sm:$0xff]  ;;  %v139_v28 = vld [vmem:[%s426_s5 + $0x40] sm:$0xff] }
  0x15   :  { %114 = vmatpush.msra.mxu1 %v101_v9  ;;  %v138_v29 = vld [vmem:[%s426_s5 + $0x38] sm:$0xff]  ;;  %v137_v30 = vld [vmem:[%s426_s5 + $0x30] sm:$0xff]  ;;  %v136_v31 = vld [vmem:[%s426_s5 + $0x28] sm:$0xff] }
  0x16   :  { %152 = vmatpush.msra.mxu2 %v145_v22  ;;  %v135_v32 = vld [vmem:[%s426_s5 + $0x20] sm:$0xff]  ;;  %v134_v33 = vld [vmem:[%s426_s5 + $0x18] sm:$0xff]  ;;  %v133_v38 = vld [vmem:[%s426_s5 + $0x10] sm:$0xff] }
  0x17   :  { %115 = vmatpush.msra.mxu1 %v100_v10  ;;  %v204_v34 = vld [vmem:[%s423_s2] ss:$0 sm:$0xff]  ;;  %v132_v39 = vld [vmem:[%s426_s5 + $0x8] sm:$0xff] }
  0x18   :  { %153 = vmatpush.msra.mxu2 %v144_v23  ;;  %v131_v40 = vld [vmem:[%s426_s5] sm:$0xff] }
  0x19   :  { %116 = vmatpush.msra.mxu1 %v99_v11  ;;  %v205_v41 = vld [vmem:[%s425_s4] ss:$0 sm:$0xff] }
  0x1a   :  { %154 = vmatpush.msra.mxu2 %v143_v24  ;;  %v206_v45 = vld [vmem:[%s427_s6] ss:$0 sm:$0xff] }
  0x1b   :  { %117 = vmatpush.msra.mxu1 %v98_v12 }
  0x1c   :  { %155 = vmatpush.msra.mxu2 %v142_v25 }
  0x1d   :  { %118 = vmatpush.msra.mxu1 %v97_v13 }
  0x1e   :  { %156 = vmatpush.msra.mxu2 %v141_v26 }
  0x1f   :  { %119 = vmatpush.msra.mxu1 %v96_v14 }
  0x20   :  { %157 = vmatpush.msra.mxu2 %v140_v27 }
  0x21   :  { %120 = vmatpush.msra.mxu1 %v95_v15 }
  0x22   :  { %158 = vmatpush.msra.mxu2 %v139_v28 }
  0x23   :  { %121 = vmatpush.msra.mxu1 %v94_v16 }
  0x24   :  { %159 = vmatpush.msra.mxu2 %v138_v29 }
  0x25   :  { %122 = vmatpush.msra.mxu1 %v93_v17 }
  0x26   :  { %160 = vmatpush.msra.mxu2 %v137_v30 }
  0x27   :  { %123 = vmatpush.msra.mxu1 %v92_v18 }
  0x28   :  { %161 = vmatpush.msra.mxu2 %v136_v31 }
  0x29   :  { %124 = vmatpush.msra.mxu1 %v91_v19 }
  0x2a   :  { %162 = vmatpush.msra.mxu2 %v135_v32 }
  0x2b   :  { %125 = vmatpush.msra.mxu1 %v90_v20 }
  0x2c   :  { %163 = vmatpush.msra.mxu2 %v134_v33 }
  0x2e   :  { %164 = vmatpush.msra.mxu2 %v133_v38 }
  0x30   :  { %165 = vmatpush.msra.mxu2 %v132_v39 }
  0x32   :  { %166 = vmatpush.msra.mxu2 %v131_v40 }
  0x90   :  { %v86_v35 = vpop.f32.mrf.mxu0 }
  0x91   :  { %v87_v36 = vadd.f32 %v204_v34, %v86_v35 }
  0x93   :  { %v89_v37 = vmax.f32 %v87_v36, 0.0 }
  0x95   :  { %126 = vmatmul.f32.vlgmr.msra.gmra.mxu1 %v89_v37 }
 0x112   :  { %v127_v42 = vpop.f32.mrf.mxu1 }
 0x113   :  { %v128_v43 = vadd.f32 %v205_v41, %v127_v42 }
 0x115   :  { %v130_v44 = vmax.f32 %v128_v43, 0.0 }
 0x117   :  { %167 = vmatmul.f32.vlgmr.msra.gmra.mxu2 %v130_v44 }
 0x19a   :  { %v168_v46 = vpop.f32.mrf.mxu2 }
 0x19b   :  { %v169_v47 = vadd.f32 %v206_v45, %v168_v46 }
 0x19d   :  { %v199_v48 = vmul.f32 -1.442695, %v169_v47 }
 0x19f   :  { %207 = vpow2.f32 %v199_v48 }
 0x1a5   :  { %v208_v49 = vpop.eup %207 }
 0x1a6   :  { %v174_v50 = vadd.f32 1.0, %v208_v49 }
 0x1a8   :  { %209 = vrcp.f32 %v174_v50  ;;  %v186_v54 = vand.u32 2147483648, %v174_v50  ;;  %v184_v56 = vand.u32 2147483647, %v174_v50  ;;  %vm180_vm2 = vweird.f32 %v174_v50 }
 0x1aa   :  { %v187_v58 = vor.u32 1.1754944e-38, %v186_v54  ;;  %vm185_vm5 = vcmp.eq.f32.partialorder %v184_v56, 8.507059e+37 }
 0x1ae   :  { %v210_v51 = vpop.eup %209 }
 0x1af   :  { %v176_v52 = vmul.f32 %v210_v51, %v174_v50  ;;  %vm181_vm1 = vweird.f32 %v210_v51 }
 0x1b0   :  { %vm182_vm3 = vmor %vm180_vm2, %vm181_vm1 }
 0x1b1   :  { %v177_v53 = vsub.f32 1.0, %v176_v52 }
 0x1b3   :  { %v178_v55 = vmul.f32 %v210_v51, %v177_v53 }
 0x1b5   :  { %v179_v57 = vadd.f32 %v210_v51, %v178_v55 }
 0x1b7   :  { %v183_v59 = vsel %vm182_vm3, %v210_v51, %v179_v57 }
 0x1b8   :  { %v188_v60 = vsel %vm185_vm5, %v187_v58, %v183_v59 }
 0x1b9   :  { %191 = vst.msk [vmem:[%s428_s7] sm:$0xff] %vm190_vm4, %v188_v60 }
 0x1ba   :  { %196 = vsyncpa [#allocation3], 1 }
 0x1bb   :  { %197 = vsyncpa [#allocation5], 1 }

</bundles_post_ra>
